<compile_context>
chip_gen: v7x
topology: tpu7x:2x2x1
jax: 0.10.0
libtpu: 0.0.40
codegen_flags: <defaults>
</compile_context>

<pallas_src>
import functools

import jax
import jax.numpy as jnp
from jax.experimental import pallas as pl
from jax.experimental.pallas import tpu as pltpu

HIDDEN = 32          # per-branch hidden width of the original module
LANES = 128          # padded (fused) hidden width = one full vreg lane span


def _round_up(x, m):
    return ((x + m - 1) // m) * m


# ---------------------------------------------------------------------------
# Kernel
# ---------------------------------------------------------------------------
def _duelq_kernel(x_ref, p_ref, out_ref, *, s_pad, off_w1, off_w2, off_w3, off_b):
    """x_ref: (TB, s_pad)  p_ref: (R, 128) packed params  out_ref: (TB, 128)."""
    x = x_ref[...]                                                # (TB, S_pad)

    # Static slices into the packed parameter blob.
    w1 = p_ref[off_w1:off_w1 + s_pad, :]                          # (S_pad, 128)
    w2 = p_ref[off_w2:off_w2 + LANES, :]                          # (128, 128)
    w3 = p_ref[off_w3:off_w3 + LANES, :]                          # (128, 128)
    bseg = p_ref[off_b:off_b + 8, :]                              # (8, 128)
    b1 = bseg[0:1, :]
    b2 = bseg[1:2, :]
    b3 = bseg[2:3, :]

    # Fused layer 1: lanes 0:32 = advantage hidden, 32:64 = value hidden,
    # 64:128 = zero padding (stays zero through ReLU and block-diag W2).
    h = jnp.maximum(jnp.dot(x, w1, preferred_element_type=jnp.float32) + b1, 0.0)
    # Fused layer 2 (block-diagonal).
    h = jnp.maximum(jnp.dot(h, w2, preferred_element_type=jnp.float32) + b2, 0.0)
    # Fused layer 3 with the dueling combine folded in: cols 0:action_size
    # are already Q; cols action_size:128 are zero.  Lane-dense full store.
    out_ref[...] = jnp.dot(h, w3, preferred_element_type=jnp.float32) + b3


# ---------------------------------------------------------------------------
# Host-side parameter packing: one (R, 128) fp32 blob, tile-aligned segments.
# ---------------------------------------------------------------------------
def pack_params(params, state_size, action_size):
    s_pad = _round_up(state_size, 8)
    off = {
        "w1": 0,
        "w2": s_pad,
        "w3": s_pad + LANES,
        "b": s_pad + 2 * LANES,        # rows 0/1/2 = bias of layers 1/2/3
    }
    rows = s_pad + 2 * LANES + 8
    blob = jnp.zeros((rows, LANES), jnp.float32)

    H = HIDDEN
    # Layer 1: [wa1 | wv1 | 0]
    blob = blob.at[off["w1"]:off["w1"] + state_size, 0:H].set(params["wa1"])
    blob = blob.at[off["w1"]:off["w1"] + state_size, H:2 * H].set(params["wv1"])
    # Layer 2: block-diagonal
    blob = blob.at[off["w2"]:off["w2"] + H, 0:H].set(params["wa2"])
    blob = blob.at[off["w2"] + H:off["w2"] + 2 * H, H:2 * H].set(params["wv2"])
    # Layer 3 with the dueling combine folded in:
    #   Q_j = hA @ (WA3[:,j] - mean_k WA3[:,k]) + hV @ WV3[:,0]
    #         + (bA3[j] - mean(bA3) + bV3)
    wa3_q = params["wa3"] - jnp.mean(params["wa3"], axis=1, keepdims=True)   # (H, A)
    wv3_q = jnp.broadcast_to(params["wv3"], (H, action_size))                # (H, A)
    b3_q = (params["ba3"] - jnp.mean(params["ba3"], axis=1, keepdims=True)
            + params["bv3"][0, 0])                                           # (1, A)
    blob = blob.at[off["w3"]:off["w3"] + H, 0:action_size].set(wa3_q)
    blob = blob.at[off["w3"] + H:off["w3"] + 2 * H, 0:action_size].set(wv3_q)
    # Bias segment (lanes 64:128 stay zero -> padding invariant preserved).
    blob = blob.at[off["b"], 0:H].set(params["ba1"][0])
    blob = blob.at[off["b"], H:2 * H].set(params["bv1"][0])
    blob = blob.at[off["b"] + 1, 0:H].set(params["ba2"][0])
    blob = blob.at[off["b"] + 1, H:2 * H].set(params["bv2"][0])
    blob = blob.at[off["b"] + 2, 0:action_size].set(b3_q[0])
    return blob, off, s_pad


# ---------------------------------------------------------------------------
# Wrapper
# ---------------------------------------------------------------------------
def duel_q_network(state, blob, *, state_size, action_size, s_pad, off,
                   batch_tile=2048):
    """state: (B, state_size) f32; blob: packed params; returns (B, action_size)."""
    B = state.shape[0]
    b_pad8 = _round_up(B, 8)

    # Tile choice: multiple of 8, at most `batch_tile`, and capped at half the
    # (padded) batch so the grid has >= 2 steps whenever B allows it — keeps
    # both TensorCores busy on v7x via the "parallel" axis.
    half = _round_up((b_pad8 + 1) // 2, 8)
    tb = max(8, min(_round_up(batch_tile, 8), half))
    b_pad = _round_up(b_pad8, tb)

    # Pad batch rows (garbage rows dropped at the end) and feature columns
    # (multiplied by zero weight rows -> no effect).
    x = jnp.pad(state, ((0, b_pad - B), (0, s_pad - state_size)))

    kernel = functools.partial(
        _duelq_kernel, s_pad=s_pad,
        off_w1=off["w1"], off_w2=off["w2"], off_w3=off["w3"], off_b=off["b"])

    out = pl.pallas_call(
        kernel,
        out_shape=jax.ShapeDtypeStruct((b_pad, LANES), jnp.float32),
        grid=(b_pad // tb,),
        in_specs=[
            pl.BlockSpec((tb, s_pad), lambda i: (i, 0)),        # state tile
            pl.BlockSpec(blob.shape, lambda i: (0, 0)),         # params, resident
        ],
        out_specs=pl.BlockSpec((tb, LANES), lambda i: (i, 0)),  # lane-dense store
        compiler_params=pltpu.CompilerParams(
            dimension_semantics=("parallel",),                  # 2 TCs on v7x
        ),
    )(x, blob)
    return out[:B, :action_size]


# ---------------------------------------------------------------------------
# Init + pure-JAX reference (original, un-fused layout)
# ---------------------------------------------------------------------------
def init_params(key, state_size, action_size):
    """nn.Linear-style init; weights stored pre-transposed as (in, out)."""
    def linear(k, fan_in, fan_out):
        kw, kb = jax.random.split(k)
        bound = 1.0 / jnp.sqrt(fan_in)
        w = jax.random.uniform(kw, (fan_in, fan_out), jnp.float32, -bound, bound)
        b = jax.random.uniform(kb, (1, fan_out), jnp.float32, -bound, bound)
        return w, b

    keys = jax.random.split(key, 6)
    wa1, ba1 = linear(keys[0], state_size, HIDDEN)
    wa2, ba2 = linear(keys[1], HIDDEN, HIDDEN)
    wa3, ba3 = linear(keys[2], HIDDEN, action_size)
    wv1, bv1 = linear(keys[3], state_size, HIDDEN)
    wv2, bv2 = linear(keys[4], HIDDEN, HIDDEN)
    wv3, bv3 = linear(keys[5], HIDDEN, 1)
    return dict(wa1=wa1, ba1=ba1, wa2=wa2, ba2=ba2, wa3=wa3, ba3=ba3,
                wv1=wv1, bv1=bv1, wv2=wv2, bv2=bv2, wv3=wv3, bv3=bv3)


def reference_forward(state, p):
    a = jax.nn.relu(state @ p["wa1"] + p["ba1"])
    a = jax.nn.relu(a @ p["wa2"] + p["ba2"])
    a = a @ p["wa3"] + p["ba3"]
    v = jax.nn.relu(state @ p["wv1"] + p["bv1"])
    v = jax.nn.relu(v @ p["wv2"] + p["bv2"])
    v = v @ p["wv3"] + p["bv3"]
    return v + a - jnp.mean(a, axis=1, keepdims=True)


if __name__ == "__main__":
    key = jax.random.PRNGKey(0)
    k_params, k_state = jax.random.split(key)

    batch = 8
    state_size = 8
    action_size = 4

    params = init_params(k_params, state_size, action_size)
    state = jax.random.normal(k_state, (batch, state_size), jnp.float32)

    blob, off, s_pad = pack_params(params, state_size, action_size)

    q = duel_q_network(state, blob, state_size=state_size,
                       action_size=action_size, s_pad=s_pad, off=off)
    q = jax.block_until_ready(q)

    q_ref = reference_forward(state, params)
    assert q.shape == (batch, action_size)
    assert jnp.allclose(q, q_ref, atol=1e-4, rtol=1e-4), "mismatch vs reference"

    print("KERNEL_OK")
</pallas_src>

<mosaic_0001>
module attributes {stable_mosaic.version = 11 : i64} {
  func.func @_duelq_kernel(%arg0: i32, %arg1: memref<8x8xf32, #tpu.memory_space<vmem>>, %arg2: memref<272x128xf32, #tpu.memory_space<vmem>>, %arg3: memref<8x128xf32, #tpu.memory_space<vmem>>) attributes {dimension_semantics = [#tpu.dimension_semantics<parallel>], iteration_bounds = array<i64: 1>, scalar_prefetch = 0 : i64, scratch_operands = 0 : i64, tpu.core_type = #tpu.core_type<tc>, window_params = [{transform_indices = @transform_0, window_bounds = array<i64: 8, 8>}, {pipeline_mode = #tpu.pipeline_mode<synchronous>, transform_indices = @transform_1, window_bounds = array<i64: 272, 128>}, {transform_indices = @transform_2, window_bounds = array<i64: 8, 128>}]} {
    %c0 = arith.constant 0 : index
    %c0_0 = arith.constant 0 : index
    %0 = vector.load %arg1[%c0, %c0_0] : memref<8x8xf32, #tpu.memory_space<vmem>>, vector<8x8xf32>
    %c0_1 = arith.constant 0 : index
    %c0_2 = arith.constant 0 : index
    %1 = vector.load %arg2[%c0_1, %c0_2] : memref<272x128xf32, #tpu.memory_space<vmem>>, vector<8x128xf32>
    %c8 = arith.constant 8 : index
    %c0_3 = arith.constant 0 : index
    %2 = vector.load %arg2[%c8, %c0_3] : memref<272x128xf32, #tpu.memory_space<vmem>>, vector<128x128xf32>
    %c136 = arith.constant 136 : index
    %c0_4 = arith.constant 0 : index
    %3 = vector.load %arg2[%c136, %c0_4] : memref<272x128xf32, #tpu.memory_space<vmem>>, vector<128x128xf32>
    %c264 = arith.constant 264 : index
    %c0_5 = arith.constant 0 : index
    %4 = vector.load %arg2[%c264, %c0_5] : memref<272x128xf32, #tpu.memory_space<vmem>>, vector<8x128xf32>
    %5 = vector.extract_strided_slice %4 {offsets = [0, 0], sizes = [1, 128], strides = [1, 1]} : vector<8x128xf32> to vector<1x128xf32>
    %6 = vector.extract_strided_slice %4 {offsets = [1, 0], sizes = [1, 128], strides = [1, 1]} : vector<8x128xf32> to vector<1x128xf32>
    %7 = vector.extract_strided_slice %4 {offsets = [2, 0], sizes = [1, 128], strides = [1, 1]} : vector<8x128xf32> to vector<1x128xf32>
    %cst = arith.constant dense<0.000000e+00> : vector<8x128xf32>
    %8 = tpu.matmul %0, %1, %cst {dimension_numbers = #tpu.dot_dimension_numbers<[1], [0], [0], [1], [0, 0, 1, 1], [], []>} : vector<8x8xf32>, vector<8x128xf32>, vector<8x128xf32> -> vector<8x128xf32>
    %9 = vector.broadcast %5 : vector<1x128xf32> to vector<8x128xf32>
    %10 = arith.addf %8, %9 : vector<8x128xf32>
    %cst_6 = arith.constant 0.000000e+00 : f32
    %11 = vector.broadcast %cst_6 : f32 to vector<8x128xf32>
    %12 = arith.maximumf %10, %11 : vector<8x128xf32>
    %cst_7 = arith.constant dense<0.000000e+00> : vector<8x128xf32>
    %13 = tpu.matmul %12, %2, %cst_7 {dimension_numbers = #tpu.dot_dimension_numbers<[1], [0], [0], [1], [0, 0, 1, 1], [], []>} : vector<8x128xf32>, vector<128x128xf32>, vector<8x128xf32> -> vector<8x128xf32>
    %14 = vector.broadcast %6 : vector<1x128xf32> to vector<8x128xf32>
    %15 = arith.addf %13, %14 : vector<8x128xf32>
    %cst_8 = arith.constant 0.000000e+00 : f32
    %16 = vector.broadcast %cst_8 : f32 to vector<8x128xf32>
    %17 = arith.maximumf %15, %16 : vector<8x128xf32>
    %cst_9 = arith.constant dense<0.000000e+00> : vector<8x128xf32>
    %18 = tpu.matmul %17, %3, %cst_9 {dimension_numbers = #tpu.dot_dimension_numbers<[1], [0], [0], [1], [0, 0, 1, 1], [], []>} : vector<8x128xf32>, vector<128x128xf32>, vector<8x128xf32> -> vector<8x128xf32>
    %19 = vector.broadcast %7 : vector<1x128xf32> to vector<8x128xf32>
    %20 = arith.addf %18, %19 : vector<8x128xf32>
    %c0_10 = arith.constant 0 : index
    %c0_11 = arith.constant 0 : index
    %21 = vector.load %arg3[%c0_10, %c0_11] : memref<8x128xf32, #tpu.memory_space<vmem>>, vector<8x128xf32>
    tpu.vector_store %arg3[%c0_10, %c0_11], %20 {strides = array<i32>} : memref<8x128xf32, #tpu.memory_space<vmem>>, vector<8x128xf32>,
    return
  }
  func.func @transform_0(%arg0: i32) -> (i32, i32) {
    %c0_i32 = arith.constant 0 : i32
    %c0_i32_0 = arith.constant 0 : i32
    return %arg0, %c0_i32 : i32, i32
  }
  func.func @transform_1(%arg0: i32) -> (i32, i32) {
    %c0_i32 = arith.constant 0 : i32
    %c0_i32_0 = arith.constant 0 : i32
    %c0_i32_1 = arith.constant 0 : i32
    return %c0_i32, %c0_i32_0 : i32, i32
  }
  func.func @transform_2(%arg0: i32) -> (i32, i32) {
    %c0_i32 = arith.constant 0 : i32
    %c0_i32_0 = arith.constant 0 : i32
    return %arg0, %c0_i32 : i32, i32
  }
}

</mosaic_0001>

<bundles_post_ra>
// kernel: tpu_custom_call.1
= control target key start
LH: loop header
LB: loop body
LE: loop exit
PB: predicated region body
PF: predicated region fallthrough
CT: control target
= control target key end

     0   :  { %7 = vsyncpa [#allocation3], 0  ;;  %s643_s0 = inlined_call_operand.hbm [shape: f32[8,8], index: 0, kind: input, shape index: {}]   ;;  %s644_s1 = inlined_call_operand.hbm [shape: f32[272,128], index: 1, kind: input, shape index: {}]   ;;  %s645_s2 = inlined_call_operand.hbm [shape: f32[8,128], index: 2, kind: output, shape index: {}]  }
   0x1   :  { %8 = vsyncpa [#allocation6], 0 }
   0x2   :  { %9 = vsyncpa [#allocation4], 0  ;;  %s558_s9 = smov [#allocation2]   ;;  %s559_s11 = smov [#allocation5]  }
   0x3   :  { %s16_s10 = sshll.u32 %s558_s9, 4  ;;  %s25_s12 = sshll.u32 %s559_s11, 4  ;;  %s17_s10 = int_to_ptr.vmem [resolvable:$true] %s16_s10  ;;  %s581_s12 = int_to_ptr.vmem [resolvable:$true] %s25_s12 }
   0x4   :  { %s486_s15 = scalar_lea.hbm %s643_s0, 128 }
   0x5   :  { %p487_p0 = scmp.ne.s32.totalorder %s643_s0, %s486_s15  ;;  %p490_p1 = scmp.lt.u32.totalorder %s486_s15, %s643_s0 }
   0x7   :  { %p492_p2 = pnand %p490_p1, %p487_p0 }
   0x9   :  { %495 = shalt.err (!%p492_p2)
}
   0xa   :  { %s496_s20 = scalar_lea.vmem %s17_s10, 128  ;;  %p501_p4 = scmp.lt.s32.totalorder %s17_s10, %s17_s10 }
   0xb   :  { %p497_p3 = scmp.ne.s32.totalorder %s17_s10, %s496_s20  ;;  %p502_p5 = scmp.lt.s32.totalorder %s496_s20, %s496_s20 }
   0xd   :  { %p503_p6 = por %p502_p5, %p501_p4 }
   0xf   :  { %p504_p7 = pnand %p503_p6, %p497_p3 }
  0x11   :  { %507 = shalt.err (!%p504_p7)
}
  0x12   :  { %19 = dma.hbm_to_vmem [thread:$0]  %s643_s0, 128, %s17_s10, [#allocation3]  }
  0x13   :  { %s508_s25 = scalar_lea.hbm %s644_s1, 4352 }
  0x14   :  { %p509_p8 = scmp.ne.s32.totalorder %s644_s1, %s508_s25  ;;  %p512_p9 = scmp.lt.u32.totalorder %s508_s25, %s644_s1 }
  0x16   :  { %p514_p10 = pnand %p512_p9, %p509_p8 }
  0x18   :  { %517 = shalt.err (!%p514_p10)
}
  0x19   :  { %s518_s30 = scalar_lea.vmem %s581_s12, 4352  ;;  %p523_p12 = scmp.lt.s32.totalorder %s581_s12, %s581_s12 }
  0x1a   :  { %p519_p11 = scmp.ne.s32.totalorder %s581_s12, %s518_s30  ;;  %p524_p13 = scmp.lt.s32.totalorder %s518_s30, %s518_s30 }
  0x1c   :  { %p525_p0 = por %p524_p13, %p523_p12 }
  0x1e   :  { %p526_p1 = pnand %p525_p0, %p519_p11 }
  0x20   :  { %529 = shalt.err (!%p526_p1)
}
  0x21   :  { %s560_s0 = smov 128   ;;  %s561_s3 = smov 8  }
  0x22   :  { %31 = dma.hbm_to_vmem [thread:$0]  %s644_s1, 4352, %s581_s12, [#allocation6], %s560_s0, %s560_s0, %s561_s3  }
  0x23   :  { %552 = dma.done.wait [#allocation3], 128  }
  0x24   :  { %553 = vsyncadd [#allocation3], 4294967168 }
  0x25   :  { %554 = dma.done.wait [#allocation6], 4352  }
  0x26   :  { %555 = vsyncadd [#allocation6], 4294962944  ;;  %v562_v0 = vmov 0.0   ;;  %vm563_vm0 = vmmov 0   ;;  %v564_v1 = vmov 0.0|0.0   ;;  %vm77_vm1 = vcmask 64512  }
  0x27   :  { %355 = vmatprep.subr.mxu0 %v562_v0  ;;  %357 = vmatprep.mubr.msk.f32.mxu0 %vm563_vm0, %v562_v0  ;;  %v39_v2 = vld [vmem:[#allocation5] sm:$0xff]  ;;  %v38_v3 = vld [vmem:[#allocation2] sm:$0xff]  ;;  %v40_v4 = vld [vmem:[#allocation5 + $0x8] sm:$0xff]  ;;  %v73_v49 = vlaneseq  ;;  %s565_s1 = smov [#allocation7]  }
  0x28   :  { %430 = vmatprep.subr.bf16.mxu1 %v564_v1  ;;  %392 = vmatprep.mubr.msk.f32.mxu1 %vm563_vm0, %v562_v0  ;;  %v41_v5 = vld [vmem:[#allocation5 + $0x10] sm:$0xff]  ;;  %v42_v6 = vld [vmem:[#allocation5 + $0x18] sm:$0xff]  ;;  %v43_v7 = vld [vmem:[#allocation5 + $0x20] sm:$0xff]  ;;  %s308_s6 = sshll.u32 %s565_s1, 4  ;;  %s309_s6 = int_to_ptr.vmem [resolvable:$true] %s308_s6 }
  0x29   :  { %356 = vmatpush3.msra.mxu0 %v39_v2  ;;  %v431_v8 = vpack.c.bf16 %v41_v5, %v40_v4  ;;  %v434_v9 = vpack.c.bf16 %v43_v7, %v42_v6  ;;  %v44_v10 = vld [vmem:[#allocation5 + $0x28] sm:$0xff]  ;;  %v45_v11 = vld [vmem:[#allocation5 + $0x30] sm:$0xff]  ;;  %v46_v13 = vld [vmem:[#allocation5 + $0x38] sm:$0xff]  ;;  %v74_v50 = vshrl.u32 %v73_v49, 7  ;;  %s530_s7 = scalar_lea.vmem %s309_s6, 128  ;;  %p535_p3 = scmp.lt.s32.totalorder %s309_s6, %s309_s6 }
  0x2a   :  { %358 = vmatmul.mubr.msk.f32.vlgmr.msra.gmra.mrb[0].mxu0 %vm77_vm1, %v38_v3  ;;  %454 = vmatprep.subr.bf16.mxu0 %v564_v1  ;;  %v437_v12 = vpack.c.bf16 %v45_v11, %v44_v10  ;;  %v47_v14 = vld [vmem:[#allocation5 + $0x40] sm:$0xff]  ;;  %v48_v16 = vld [vmem:[#allocation5 + $0x48] sm:$0xff]  ;;  %v49_v17 = vld [vmem:[#allocation5 + $0x50] sm:$0xff]  ;;  %p531_p2 = scmp.ne.s32.totalorder %s309_s6, %s530_s7  ;;  %p536_p4 = scmp.lt.s32.totalorder %s530_s7, %s530_s7 }
  0x2b   :  { %427 = vmatprep.mubr.msk.f32.mxu0 %vm563_vm0, %v562_v0  ;;  %432 = vmatpush3.bf16.msra.mxu1 %v431_v8  ;;  %v440_v15 = vpack.c.bf16 %v47_v14, %v46_v13  ;;  %v443_v18 = vpack.c.bf16 %v49_v17, %v48_v16  ;;  %v50_v19 = vld [vmem:[#allocation5 + $0x58] sm:$0xff]  ;;  %v51_v20 = vld [vmem:[#allocation5 + $0x60] sm:$0xff]  ;;  %v52_v22 = vld [vmem:[#allocation5 + $0x68] sm:$0xff]  ;;  %v75_v51 = vsub.s32 0, %v74_v50  ;;  %v154_v61 = vsub.s32 1, %v74_v50 }
  0x2c   :  { %433 = vmatprep.subr.bf16.mxu1 %v564_v1  ;;  %v446_v21 = vpack.c.bf16 %v51_v20, %v50_v19  ;;  %v53_v23 = vld [vmem:[#allocation5 + $0x70] sm:$0xff]  ;;  %v54_v25 = vld [vmem:[#allocation5 + $0x78] sm:$0xff]  ;;  %v55_v26 = vld [vmem:[#allocation5 + $0x80] sm:$0xff]  ;;  %v229_v3 = vsub.s32 2, %v74_v50  ;;  %p537_p5 = por %p536_p4, %p535_p3 }
  0x2d   :  { %v449_v24 = vpack.c.bf16 %v53_v23, %v52_v22  ;;  %v452_v27 = vpack.c.bf16 %v55_v26, %v54_v25  ;;  %v56_v28 = vld [vmem:[#allocation5 + $0x88] sm:$0xff]  ;;  %v57_v29 = vld [vmem:[#allocation5 + $0x90] sm:$0xff]  ;;  %v58_v30 = vld [vmem:[#allocation5 + $0x98] sm:$0xff] }
  0x2e   :  { %v455_v31 = vpack.c.bf16 %v57_v29, %v56_v28  ;;  %v59_v32 = vld [vmem:[#allocation5 + $0xa0] sm:$0xff]  ;;  %v60_v34 = vld [vmem:[#allocation5 + $0xa8] sm:$0xff]  ;;  %v61_v35 = vld [vmem:[#allocation5 + $0xb0] sm:$0xff]  ;;  %p538_p6 = pnand %p537_p5, %p531_p2 }
  0x2f   :  { %435 = vmatpush3.bf16.msra.mxu1 %v434_v9  ;;  %v458_v33 = vpack.c.bf16 %v59_v32, %v58_v30  ;;  %v461_v36 = vpack.c.bf16 %v61_v35, %v60_v34  ;;  %v62_v37 = vld [vmem:[#allocation5 + $0xb8] sm:$0xff]  ;;  %v63_v38 = vld [vmem:[#allocation5 + $0xc0] sm:$0xff]  ;;  %v64_v40 = vld [vmem:[#allocation5 + $0xc8] sm:$0xff] }
  0x30   :  { %436 = vmatprep.subr.bf16.mxu1 %v564_v1  ;;  %456 = vmatpush3.bf16.msra.mxu0 %v455_v31  ;;  %v464_v39 = vpack.c.bf16 %v63_v38, %v62_v37  ;;  %v65_v41 = vld [vmem:[#allocation5 + $0xd0] sm:$0xff]  ;;  %v66_v43 = vld [vmem:[#allocation5 + $0xd8] sm:$0xff]  ;;  %v67_v44 = vld [vmem:[#allocation5 + $0xe0] sm:$0xff] }
  0x31   :  { %457 = vmatprep.subr.bf16.mxu0 %v564_v1  ;;  %v467_v42 = vpack.c.bf16 %v65_v41, %v64_v40  ;;  %v470_v45 = vpack.c.bf16 %v67_v44, %v66_v43  ;;  %v68_v46 = vld [vmem:[#allocation5 + $0xe8] sm:$0xff]  ;;  %v69_v47 = vld [vmem:[#allocation5 + $0xf0] sm:$0xff]  ;;  %v70_v58 = vld [vmem:[#allocation5 + $0xf8] sm:$0xff] }
  0x32   :  { %v473_v48 = vpack.c.bf16 %v69_v47, %v68_v46  ;;  %v72_v52 = vld [vmem:[#allocation5 + $0x108] sm:$0xff]  ;;  %v71_v59 = vld [vmem:[#allocation5 + $0x100] sm:$0xff] }
  0x33   :  { %438 = vmatpush3.bf16.msra.mxu1 %v437_v12  ;;  %v76_v53 = vrot.slane %v72_v52, %v75_v51  ;;  %v476_v60 = vpack.c.bf16 %v71_v59, %v70_v58  ;;  %v155_v62 = vrot.slane %v72_v52, %v154_v61  ;;  %v230_v4 = vrot.slane %v72_v52, %v229_v3 }
  0x34   :  { %439 = vmatprep.subr.bf16.mxu1 %v564_v1  ;;  %459 = vmatpush3.bf16.msra.mxu0 %v458_v33 }
  0x35   :  { %460 = vmatprep.subr.bf16.mxu0 %v564_v1 }
  0x37   :  { %441 = vmatpush3.bf16.msra.mxu1 %v440_v15 }
  0x38   :  { %442 = vmatprep.subr.bf16.mxu1 %v564_v1  ;;  %462 = vmatpush3.bf16.msra.mxu0 %v461_v36 }
  0x39   :  { %463 = vmatprep.subr.bf16.mxu0 %v564_v1 }
  0x3b   :  { %444 = vmatpush3.bf16.msra.mxu1 %v443_v18 }
  0x3c   :  { %445 = vmatprep.subr.bf16.mxu1 %v564_v1  ;;  %465 = vmatpush3.bf16.msra.mxu0 %v464_v39 }
  0x3d   :  { %466 = vmatprep.subr.bf16.mxu0 %v564_v1 }
  0x3f   :  { %447 = vmatpush3.bf16.msra.mxu1 %v446_v21 }
  0x40   :  { %448 = vmatprep.subr.bf16.mxu1 %v564_v1  ;;  %468 = vmatpush3.bf16.msra.mxu0 %v467_v42 }
  0x41   :  { %469 = vmatprep.subr.bf16.mxu0 %v564_v1 }
  0x43   :  { %450 = vmatpush3.bf16.msra.mxu1 %v449_v24 }
  0x44   :  { %451 = vmatprep.subr.bf16.mxu1 %v564_v1  ;;  %471 = vmatpush3.bf16.msra.mxu0 %v470_v45 }
  0x45   :  { %472 = vmatprep.subr.bf16.mxu0 %v564_v1 }
  0x47   :  { %453 = vmatpush3.bf16.msra.mxu1 %v452_v27 }
  0x48   :  { %474 = vmatpush3.bf16.msra.mxu0 %v473_v48 }
  0x49   :  { %475 = vmatprep.subr.bf16.mxu0 %v564_v1 }
  0x4c   :  { %477 = vmatpush3.bf16.msra.mxu0 %v476_v60 }
  0xfd   :  { %v147_v54 = vpop.f32.mrb[0].mxu0 }
  0xfe   :  { %v148_v55 = vadd.f32 %v147_v54, %v76_v53  ;;  %v359_v56 = vpop.f32.mrb[1].mxu0 }
 0x100   :  { %v151_v57 = vmax.f32 %v148_v55, 0.0 }
 0x102   :  { %393 = vmatmul.mubr.f32.vlgmr.msra.gmra.mrb[0].mxu1 %v151_v57 }
 0x1d5   :  { %v222_v63 = vpop.f32.mrb[0].mxu1 }
 0x1d6   :  { %v223_v0 = vadd.f32 %v222_v63, %v155_v62  ;;  %v394_v2 = vpop.f32.mrb[1].mxu1 }
 0x1d8   :  { %v226_v1 = vmax.f32 %v223_v0, 0.0 }
 0x1da   :  { %428 = vmatmul.mubr.f32.vlgmr.msra.gmra.mrb[2].mxu0 %v226_v1 }
 0x2ad   :  { %v297_v5 = vpop.f32.mrb[2].mxu0 }
 0x2ae   :  { %v298_v6 = vadd.f32 %v297_v5, %v230_v4  ;;  %v429_v7 = vpop.f32.mrb[3].mxu0 }
 0x2b0   :  { %301 = vst [vmem:[#allocation7] sm:$0xff] %v298_v6 }
 0x2b1   :  { %541 = shalt.err (!%p538_p6)
}
 0x2b2   :  { %s542_s10 = scalar_lea.hbm %s645_s2, 128 }
 0x2b3   :  { %p543_p7 = scmp.ne.s32.totalorder %s645_s2, %s542_s10  ;;  %p546_p8 = scmp.lt.u32.totalorder %s542_s10, %s645_s2 }
 0x2b5   :  { %p548_p9 = pnand %p546_p8, %p543_p7 }
 0x2b7   :  { %551 = shalt.err (!%p548_p9)
}
 0x2b8   :  { %311 = dma.vmem_to_hbm [thread:$0]  %s309_s6, 128, %s645_s2, [#allocation4]  }
 0x2b9   :  { %556 = dma.done.wait [#allocation4], 128  }
 0x2ba   :  { %557 = vsyncadd [#allocation4], 4294967168 }
 0x2bb   :  { %315 = vsyncpa [#allocation3], 1 }
 0x2bc   :  { %316 = vsyncpa [#allocation6], 1 }
 0x2bd   :  { %317 = vsyncpa [#allocation4], 1 }

</bundles_post_ra>
